<compile_context>
chip_gen: v7x
topology: tpu7x:2x2x1
jax: 0.10.0
libtpu: 0.0.40
codegen_flags: <defaults>
</compile_context>

<pallas_src>
import functools

import jax
import jax.numpy as jnp
from jax.experimental import pallas as pl
from jax.experimental.pallas import tpu as pltpu

_NEG = -1e30  # finite "masked" value: keeps online softmax NaN-free.


def _tile(dim, preferred):
    """Largest tile <= preferred that evenly divides dim (128-aligned), else full dim."""
    if dim <= preferred:
        return dim
    t = preferred
    while t >= 128:
        if dim % t == 0:
            return t
        t -= 128
    return dim


def _vmem_limit(needed_bytes):
    """Explicit scoped-VMEM budget: floor 32 MiB, cap 64 MiB (legal on v5e/v6e/v7x)."""
    return int(min(max(32 << 20, int(needed_bytes * 1.5) + (2 << 20)), 64 << 20))


# ----------------------------------------------------------------------------
# Tiled matmul: y = x @ w   (w pre-transposed to (K, N)); f32 output, resident
# across the K axis -> accumulate directly into o_ref (no scratch, no copy).
# ----------------------------------------------------------------------------
def _matmul_kernel(x_ref, w_ref, o_ref):
    @pl.when(pl.program_id(2) == 0)
    def _():
        o_ref[...] = jnp.zeros_like(o_ref)

    o_ref[...] += jnp.dot(x_ref[...], w_ref[...],
                          preferred_element_type=jnp.float32)


def pallas_linear(x2d, w, *, tm=512, tn=512, tk=512):
    """x2d: (M, K), w: (K, N) -> (M, N) f32 (accumulated in f32 in the output tile)."""
    M, K = x2d.shape
    K2, N = w.shape
    assert K == K2
    tm, tn, tk = _tile(M, tm), _tile(N, tn), _tile(K, tk)
    ib = x2d.dtype.itemsize
    needed = 2 * (tm * tk + tk * tn) * ib + 2 * tm * tn * 4
    return pl.pallas_call(
        _matmul_kernel,
        out_shape=jax.ShapeDtypeStruct((M, N), jnp.float32),
        grid=(M // tm, N // tn, K // tk),
        in_specs=[pl.BlockSpec((tm, tk), lambda i, j, k: (i, k)),
                  pl.BlockSpec((tk, tn), lambda i, j, k: (k, j))],
        out_specs=pl.BlockSpec((tm, tn), lambda i, j, k: (i, j)),
        compiler_params=pltpu.CompilerParams(
            dimension_semantics=("parallel", "parallel", "arbitrary"),
            vmem_limit_bytes=_vmem_limit(needed)),
    )(x2d, w)


# ----------------------------------------------------------------------------
# Fused c_kv = LayerNorm(x @ W_dkv^T), row-tiled, two-pass variance, bf16 out.
# ----------------------------------------------------------------------------
def _dkv_ln_kernel(x_ref, w_ref, g_ref, b_ref, o_ref):
    c = jnp.dot(x_ref[...], w_ref[...], preferred_element_type=jnp.float32)
    mean = jnp.mean(c, axis=-1, keepdims=True)
    d = c - mean
    var = jnp.mean(d * d, axis=-1, keepdims=True)      # two-pass: no cancellation
    y = d * jax.lax.rsqrt(var + 1e-5)
    o_ref[...] = (y * g_ref[...] + b_ref[...]).astype(o_ref.dtype)


def pallas_dkv_layernorm(x2d, w_dkv_t, gamma, beta, *, tm=256,
                         out_dtype=jnp.bfloat16):
    """x2d: (M, D), w_dkv_t: (D, L), gamma/beta: (1, L) -> (M, L) out_dtype."""
    M, D = x2d.shape
    _, L = w_dkv_t.shape
    tm = _tile(M, tm)
    ib = x2d.dtype.itemsize
    ob = jnp.dtype(out_dtype).itemsize
    needed = 2 * (tm * D * ib + D * L * ib + 2 * L * 4 + tm * L * ob)
    # TODO(synk): constant-index weight specs (w, gamma, beta) could be single-
    # buffered via pipeline_mode=pl.Buffered(1) to save VMEM on v7x/v5e.
    return pl.pallas_call(
        _dkv_ln_kernel,
        out_shape=jax.ShapeDtypeStruct((M, L), out_dtype),
        grid=(M // tm,),
        in_specs=[pl.BlockSpec((tm, D), lambda i: (i, 0)),
                  pl.BlockSpec((D, L), lambda i: (0, 0)),
                  pl.BlockSpec((1, L), lambda i: (0, 0)),
                  pl.BlockSpec((1, L), lambda i: (0, 0))],
        out_specs=pl.BlockSpec((tm, L), lambda i: (i, 0)),
        compiler_params=pltpu.CompilerParams(
            dimension_semantics=("parallel",),
            vmem_limit_bytes=_vmem_limit(needed)),
    )(x2d, w_dkv_t, gamma, beta)


# ----------------------------------------------------------------------------
# Flash-style absorbed-KV attention.
#   grid = (B, head_chunks, q_tiles, kv_tiles), kv innermost ("arbitrary").
#   Heads of a chunk are folded into the matmul M dimension (hc*tq rows).
#   Epilogue: per-head ctx_latent @ W_uv_h -> lane-dense (tq, hc*dh) out block.
# ----------------------------------------------------------------------------
def _attn_vmem_bytes(tq, tkv, hc, dh, L, in_bytes, out_bytes):
    d_blk = hc * dh
    resident = 2 * tq * d_blk * in_bytes           # q  (double-buffered)
    resident += 2 * hc * dh * L * in_bytes         # absorbed_k chunk
    resident += 2 * tkv * L * in_bytes             # c_kv stream
    resident += 2 * hc * L * dh * in_bytes         # W_uv chunk
    resident += 2 * tq * d_blk * out_bytes         # out tile
    scratch = hc * tq * (L * (in_bytes + 4) + 2 * 4)
    return resident + scratch


def _pick_head_chunk(nh, dh, L, tq, tkv, in_bytes, out_bytes, budget=40 << 20):
    """Largest head chunk whose footprint fits `budget` and keeps the out block lane-dense."""
    cands = [hc for hc in range(1, nh + 1)
             if nh % hc == 0 and (hc == nh or (hc * dh) % 128 == 0)]
    for hc in sorted(cands, reverse=True):
        if _attn_vmem_bytes(tq, tkv, hc, dh, L, in_bytes, out_bytes) <= budget:
            return hc
    return cands[0]


def _attn_kernel(past_ref, lastb_ref, q_ref, ak_ref, ckv_ref, wuv_ref, o_ref,
                 tmp_sc, m_sc, l_sc, acc_sc, *, hc, dh, tq, tkv):
    qi = pl.program_id(2)
    kj = pl.program_id(3)
    num_kv = pl.num_programs(3)
    past = past_ref[0]

    # ---- per-(b, chunk, q_tile) init: softmax state + tmp = q_h @ absorbed_k_h
    @pl.when(kj == 0)
    def _():
        m_sc[...] = jnp.full_like(m_sc, _NEG)
        l_sc[...] = jnp.zeros_like(l_sc)
        acc_sc[...] = jnp.zeros_like(acc_sc)
        q = q_ref[...]                                       # (tq, hc*dh)
        for h in range(hc):                                  # once per q tile (amortized over kv)
            qh = q[:, h * dh:(h + 1) * dh]                   # (tq, dh)
            t = jnp.dot(qh, ak_ref[h], preferred_element_type=jnp.float32)
            tmp_sc[pl.ds(h * tq, tq), :] = t.astype(tmp_sc.dtype)

    q_start = qi * tq
    k_start = kj * tkv
    is_needed = k_start <= q_start + (tq - 1) + past          # tile has any unmasked col
    is_full = k_start + (tkv - 1) <= q_start + past           # tile fully below diagonal

    def _scores():
        # (hc*tq, L) x (tkv, L)^T -> (hc*tq, tkv): ONE MXU op for all heads.
        return jax.lax.dot_general(tmp_sc[...], ckv_ref[...],
                                   (((1,), (1,)), ((), ())),
                                   preferred_element_type=jnp.float32)

    def _online_update(s):
        ckv = ckv_ref[...]                                   # (tkv, L)
        m_prev = m_sc[...]
        m_new = jnp.maximum(m_prev, jnp.max(s, axis=-1, keepdims=True))
        alpha = jnp.exp(m_prev - m_new)
        p = jnp.exp(s - m_new)
        l_sc[...] = alpha * l_sc[...] + jnp.sum(p, axis=-1, keepdims=True)
        # absorbed-V: accumulate in latent space (hc*tq, L); ONE MXU op for all heads.
        acc_sc[...] = alpha * acc_sc[...] + jnp.dot(
            p.astype(ckv.dtype), ckv, preferred_element_type=jnp.float32)
        m_sc[...] = m_new

    # ---- interior tile: fully unmasked fast path (no iota / compare / select)
    @pl.when(is_full)
    def _():
        _online_update(_scores())

    # ---- diagonal-crossing tile: apply the causal mask (heads broadcast)
    @pl.when(jnp.logical_and(is_needed, jnp.logical_not(is_full)))
    def _():
        s = _scores()                                        # (hc*tq, tkv)
        rows = q_start + jax.lax.broadcasted_iota(
            jnp.int32, (hc, tq, tkv), 1).reshape(hc * tq, tkv)
        cols = k_start + jax.lax.broadcasted_iota(
            jnp.int32, (hc * tq, tkv), 1)
        s = jnp.where(cols <= rows + past, s, _NEG)
        _online_update(s)

    # ---- epilogue: apply per-head W_uv slice, write lane-dense (tq, hc*dh) ----
    @pl.when(kj == num_kv - 1)
    def _():
        for h in range(hc):
            inv_l = pl.reciprocal(l_sc[pl.ds(h * tq, tq), :], approx=True)   # EUP
            ctx_lat = (acc_sc[pl.ds(h * tq, tq), :] * inv_l).astype(wuv_ref.dtype)
            out_h = jnp.dot(ctx_lat, wuv_ref[h],
                            preferred_element_type=jnp.float32)             # (tq, dh)
            o_ref[:, h * dh:(h + 1) * dh] = out_h.astype(o_ref.dtype)


def pallas_attention(q, absorbed_k, c_kv, w_uv_heads, *, past_length=0,
                     tq=128, tkv=256, head_chunk=None, out_dtype=None):
    """
    q:           (B, S, D)      compute dtype (heads sliced inside the kernel)
    absorbed_k:  (nh, dh, L)    compute dtype (1/sqrt(dh) pre-folded)
    c_kv:        (B, S_full, L) compute dtype
    w_uv_heads:  (nh, L, dh)    compute dtype
    -> ctx:      (B, S, D)      out_dtype (defaults to q.dtype, i.e. bf16)
    """
    B, S, D = q.shape
    nh, dh, L = absorbed_k.shape
    _, S_full, _ = c_kv.shape
    out_dtype = q.dtype if out_dtype is None else out_dtype
    tq = _tile(S, tq)
    tkv = _tile(S_full, tkv)
    in_bytes = q.dtype.itemsize
    out_bytes = jnp.dtype(out_dtype).itemsize
    hc = (_pick_head_chunk(nh, dh, L, tq, tkv, in_bytes, out_bytes)
          if head_chunk is None else head_chunk)
    nc = nh // hc
    num_q = S // tq
    num_kv = S_full // tkv

    # Scalar-prefetch operands (SMEM): dynamic past_length + per-q-tile clamp of
    # the last causally-needed KV block (so masked tiles re-map to an already
    # fetched block index and issue NO DMA).
    past = jnp.asarray(past_length, jnp.int32)
    past_arr = jnp.reshape(past, (1,))
    q_starts = jnp.arange(num_q, dtype=jnp.int32) * tq
    kv_last_block = jnp.minimum((q_starts + (tq - 1) + past) // tkv,
                                num_kv - 1).astype(jnp.int32)

    def q_map(b, c, qi, kj, past_ref, lastb_ref):
        return (b, qi, c)

    def ak_map(b, c, qi, kj, past_ref, lastb_ref):
        return (c, 0, 0)

    def ckv_map(b, c, qi, kj, past_ref, lastb_ref):
        return (b, jnp.minimum(kj, lastb_ref[qi]), 0)

    def wuv_map(b, c, qi, kj, past_ref, lastb_ref):
        return (c, 0, 0)

    def o_map(b, c, qi, kj, past_ref, lastb_ref):
        return (b, qi, c)

    kernel = functools.partial(_attn_kernel, hc=hc, dh=dh, tq=tq, tkv=tkv)
    needed = _attn_vmem_bytes(tq, tkv, hc, dh, L, in_bytes, out_bytes)
    # TODO(synk): absorbed_k / W_uv have constant block indices within a chunk;
    # pipeline_mode=pl.Buffered(1) would drop their second VMEM buffer.
    grid_spec = pltpu.PrefetchScalarGridSpec(
        num_scalar_prefetch=2,
        grid=(B, nc, num_q, num_kv),                    # B*nc*num_q parallel work
        in_specs=[
            pl.BlockSpec((None, tq, hc * dh), q_map),   # q, resident over kv axis
            pl.BlockSpec((hc, dh, L), ak_map),          # absorbed_k chunk
            pl.BlockSpec((None, tkv, L), ckv_map),      # c_kv stream (clamped)
            pl.BlockSpec((hc, L, dh), wuv_map),         # W_uv chunk
        ],
        out_specs=pl.BlockSpec((None, tq, hc * dh), o_map),
        scratch_shapes=[
            pltpu.VMEM((hc * tq, L), q.dtype),          # tmp = q @ absorbed_k
            pltpu.VMEM((hc * tq, 1), jnp.float32),      # running max
            pltpu.VMEM((hc * tq, 1), jnp.float32),      # running denom
            pltpu.VMEM((hc * tq, L), jnp.float32),      # latent accumulator
        ])
    return pl.pallas_call(
        kernel,
        out_shape=jax.ShapeDtypeStruct((B, S, D), out_dtype),
        grid_spec=grid_spec,
        compiler_params=pltpu.CompilerParams(
            dimension_semantics=("parallel", "parallel", "parallel", "arbitrary"),
            vmem_limit_bytes=_vmem_limit(needed)),
    )(past_arr, kv_last_block, q, absorbed_k, c_kv, w_uv_heads)


# ----------------------------------------------------------------------------
# Module wrapper: parameter init (weight-only precomputes hoisted here) + glue
# ----------------------------------------------------------------------------
def init_params(key, d_model, n_heads, kv_latent_dim, compute_dtype=jnp.bfloat16):
    ks = jax.random.split(key, 5)
    dh = d_model // n_heads

    def linear_w(k, out_f, in_f):
        bound = 1.0 / (in_f ** 0.5)
        return jax.random.uniform(k, (out_f, in_f), jnp.float32, -bound, bound)

    W_q = linear_w(ks[0], d_model, d_model)
    W_dkv = linear_w(ks[1], kv_latent_dim, d_model)
    W_uk = linear_w(ks[2], d_model, kv_latent_dim)
    W_uv = linear_w(ks[3], d_model, kv_latent_dim)
    W_o = linear_w(ks[4], d_model, d_model)

    # absorbed_k = W_q @ W_uk computed ONCE (hoisted out of forward); fold the
    # 1/sqrt(dh) softmax scale in so the attention kernel skips the VPU mul.
    absorbed = pallas_linear(W_q, W_uk)                       # (D, L) f32
    absorbed_k = (absorbed * (1.0 / dh ** 0.5)).reshape(n_heads, dh, kv_latent_dim)

    return {
        # f32 master weights (used by the pure-JAX reference).
        "W_q": W_q, "W_dkv": W_dkv, "W_uk": W_uk, "W_uv": W_uv, "W_o": W_o,
        "ln_gamma": jnp.ones((kv_latent_dim,), jnp.float32),
        "ln_beta": jnp.zeros((kv_latent_dim,), jnp.float32),
        "n_heads": n_heads,
        "compute_dtype": compute_dtype,
        # Pre-laid-out / pre-cast operands for the Pallas path.
        "absorbed_k_scaled": absorbed_k.astype(compute_dtype),          # (nh, dh, L)
        "W_dkv_T": W_dkv.T.astype(compute_dtype),                       # (D, L)
        "W_uv_heads": jnp.transpose(
            W_uv.reshape(n_heads, dh, kv_latent_dim), (0, 2, 1)
        ).astype(compute_dtype),                                        # (nh, L, dh)
        "W_o_T": W_o.T.astype(compute_dtype),                           # (D, D)
    }


def ropeless_attention_forward(params, x, kv_cache=None, past_length=0):
    B, S, D = x.shape
    L = params["W_dkv"].shape[0]
    cd = params["compute_dtype"]

    # c_kv = LayerNorm(W_dkv(x)) — fused, row-tiled, LN math in f32, bf16 out
    # (kv cache stays bf16 end-to-end: no f32 HBM round trip).
    new_c_kv = pallas_dkv_layernorm(
        x.reshape(B * S, D).astype(cd), params["W_dkv_T"],
        params["ln_gamma"].reshape(1, L),
        params["ln_beta"].reshape(1, L), out_dtype=cd).reshape(B, S, L)

    # TODO(synk): decode path should use a preallocated (B, S_max, L) cache
    # updated in place via input_output_aliases instead of jnp.concatenate.
    c_kv = new_c_kv if kv_cache is None else jnp.concatenate(
        [kv_cache.astype(cd), new_c_kv], axis=1)

    # Flash-tiled absorbed-KV attention; heads batched into the MXU M dim,
    # masked KV tiles skip both compute and DMA, bf16 lane-dense output.
    ctx = pallas_attention(x.astype(cd), params["absorbed_k_scaled"],
                           c_kv, params["W_uv_heads"],
                           past_length=past_length, out_dtype=cd)

    # Output projection (f32 accumulate into the resident output tile).
    out = pallas_linear(ctx.reshape(B * S, D), params["W_o_T"]).reshape(B, S, D)
    return out, c_kv


# ----------------------------------------------------------------------------
# Pure-JAX reference (mirrors the PyTorch forward)
# ----------------------------------------------------------------------------
def reference_forward(params, x, kv_cache=None, past_length=0):
    P = jax.lax.Precision.HIGHEST
    B, S, D = x.shape
    nh = params["n_heads"]
    dh = D // nh
    L = params["W_dkv"].shape[0]

    c = jnp.einsum("bsd,ld->bsl", x, params["W_dkv"], precision=P)
    mean = c.mean(-1, keepdims=True)
    var = ((c - mean) ** 2).mean(-1, keepdims=True)
    new_c_kv = (c - mean) / jnp.sqrt(var + 1e-5) * params["ln_gamma"] + params["ln_beta"]
    c_kv = new_c_kv if kv_cache is None else jnp.concatenate(
        [kv_cache, new_c_kv], axis=1)
    S_full = c_kv.shape[1]

    v = jnp.einsum("btl,dl->btd", c_kv, params["W_uv"],
                   precision=P).reshape(B, S_full, nh, dh)
    q = x.reshape(B, S, nh, dh)
    absorbed = jnp.matmul(params["W_q"], params["W_uk"],
                          precision=P).reshape(nh, dh, L)

    tmp = jnp.einsum("bshd,hdl->bshl", q, absorbed, precision=P)
    scores = jnp.einsum("bshl,btl->bhst", tmp, c_kv, precision=P) / (dh ** 0.5)
    mask = jnp.tril(jnp.ones((S, S_full), jnp.float32), k=past_length)
    scores = jnp.where(mask[None, None] == 0, -jnp.inf, scores)
    w = jax.nn.softmax(scores, axis=-1)
    ctx = jnp.einsum("bhst,bthd->bshd", w, v, precision=P).reshape(B, S, D)
    out = jnp.einsum("bsd,od->bso", ctx, params["W_o"], precision=P)
    return out, c_kv


if __name__ == "__main__":
    d_model, n_heads, kv_latent_dim = 32, 4, 16
    B, S = 2, 8

    key = jax.random.PRNGKey(0)
    k_param, k_x, k_x2 = jax.random.split(key, 3)
    params = init_params(k_param, d_model, n_heads, kv_latent_dim,
                         compute_dtype=jnp.bfloat16)
    x = jax.random.normal(k_x, (B, S, d_model), jnp.float32)

    # --- step 1: prefill (no cache) -----------------------------------------
    out, c_kv = ropeless_attention_forward(params, x, kv_cache=None, past_length=0)
    out = jax.block_until_ready(out)
    c_kv = jax.block_until_ready(c_kv)
    ref_out, ref_ckv = reference_forward(params, x, kv_cache=None, past_length=0)
    assert out.shape == (B, S, d_model)
    assert c_kv.shape == (B, S, kv_latent_dim)
    # bf16 MXU operands / bf16 intermediates -> loose tolerance vs f32-HIGHEST ref.
    assert jnp.allclose(out, ref_out, atol=5e-2, rtol=5e-2), \
        float(jnp.max(jnp.abs(out - ref_out)))
    assert jnp.allclose(c_kv.astype(jnp.float32), ref_ckv, atol=5e-2, rtol=5e-2), \
        float(jnp.max(jnp.abs(c_kv.astype(jnp.float32) - ref_ckv)))

    # --- step 2: extend with a KV cache (past_length > 0) -------------------
    x2 = jax.random.normal(k_x2, (B, S, d_model), jnp.float32)
    out2, c_kv2 = ropeless_attention_forward(params, x2, kv_cache=c_kv,
                                             past_length=S)
    out2 = jax.block_until_ready(out2)
    c_kv2 = jax.block_until_ready(c_kv2)
    ref_out2, ref_ckv2 = reference_forward(params, x2, kv_cache=ref_ckv,
                                           past_length=S)
    assert out2.shape == (B, S, d_model)
    assert c_kv2.shape == (B, 2 * S, kv_latent_dim)
    assert jnp.allclose(out2, ref_out2, atol=5e-2, rtol=5e-2), \
        float(jnp.max(jnp.abs(out2 - ref_out2)))
    assert jnp.allclose(c_kv2.astype(jnp.float32), ref_ckv2, atol=5e-2, rtol=5e-2), \
        float(jnp.max(jnp.abs(c_kv2.astype(jnp.float32) - ref_ckv2)))

    print("KERNEL_OK")
</pallas_src>

<mosaic_0001>
module attributes {stable_mosaic.version = 11 : i64} {
  func.func @_matmul_kernel(%arg0: i32, %arg1: i32, %arg2: i32, %arg3: memref<32x32xf32, #tpu.memory_space<vmem>>, %arg4: memref<32x16xf32, #tpu.memory_space<vmem>>, %arg5: memref<32x16xf32, #tpu.memory_space<vmem>>) attributes {dimension_semantics = [#tpu.dimension_semantics<parallel>, #tpu.dimension_semantics<parallel>, #tpu.dimension_semantics<arbitrary>], iteration_bounds = array<i64: 1, 1, 1>, scalar_prefetch = 0 : i64, scratch_operands = 0 : i64, tpu.core_type = #tpu.core_type<tc>, window_params = [{transform_indices = @transform_0, window_bounds = array<i64: 32, 32>}, {transform_indices = @transform_1, window_bounds = array<i64: 32, 16>}, {transform_indices = @transform_2, window_bounds = array<i64: 32, 16>}]} {
    %c0_i32 = arith.constant 0 : i32
    %0 = arith.cmpi eq, %arg2, %c0_i32 : i32
    %1 = arith.extui %0 : i1 to i32
    %c0_i32_0 = arith.constant 0 : i32
    %2 = arith.cmpi ne, %1, %c0_i32_0 : i32
    scf.if %2 {
      %cst_8 = arith.constant 0.000000e+00 : f32
      %9 = vector.broadcast %cst_8 : f32 to vector<32x16xf32>
      %c0_9 = arith.constant 0 : index
      %c0_10 = arith.constant 0 : index
      %10 = vector.load %arg5[%c0_9, %c0_10] : memref<32x16xf32, #tpu.memory_space<vmem>>, vector<32x16xf32>
      tpu.vector_store %arg5[%c0_9, %c0_10], %9 {strides = array<i32>} : memref<32x16xf32, #tpu.memory_space<vmem>>, vector<32x16xf32>,
    } else {
    }
    %c0 = arith.constant 0 : index
    %c0_1 = arith.constant 0 : index
    %3 = vector.load %arg5[%c0, %c0_1] : memref<32x16xf32, #tpu.memory_space<vmem>>, vector<32x16xf32>
    %c0_2 = arith.constant 0 : index
    %c0_3 = arith.constant 0 : index
    %4 = vector.load %arg3[%c0_2, %c0_3] : memref<32x32xf32, #tpu.memory_space<vmem>>, vector<32x32xf32>
    %c0_4 = arith.constant 0 : index
    %c0_5 = arith.constant 0 : index
    %5 = vector.load %arg4[%c0_4, %c0_5] : memref<32x16xf32, #tpu.memory_space<vmem>>, vector<32x16xf32>
    %cst = arith.constant dense<0.000000e+00> : vector<32x16xf32>
    %6 = tpu.matmul %4, %5, %cst {dimension_numbers = #tpu.dot_dimension_numbers<[1], [0], [0], [1], [0, 0, 1, 1], [], []>} : vector<32x32xf32>, vector<32x16xf32>, vector<32x16xf32> -> vector<32x16xf32>
    %7 = arith.addf %3, %6 : vector<32x16xf32>
    %c0_6 = arith.constant 0 : index
    %c0_7 = arith.constant 0 : index
    %8 = vector.load %arg5[%c0_6, %c0_7] : memref<32x16xf32, #tpu.memory_space<vmem>>, vector<32x16xf32>
    tpu.vector_store %arg5[%c0_6, %c0_7], %7 {strides = array<i32>} : memref<32x16xf32, #tpu.memory_space<vmem>>, vector<32x16xf32>,
    return
  }
  func.func @transform_0(%arg0: i32, %arg1: i32, %arg2: i32) -> (i32, i32) {
    %c0_i32 = arith.constant 0 : i32
    return %arg0, %arg2 : i32, i32
  }
  func.func @transform_1(%arg0: i32, %arg1: i32, %arg2: i32) -> (i32, i32) {
    %c0_i32 = arith.constant 0 : i32
    return %arg2, %arg1 : i32, i32
  }
  func.func @transform_2(%arg0: i32, %arg1: i32, %arg2: i32) -> (i32, i32) {
    %c0_i32 = arith.constant 0 : i32
    return %arg0, %arg1 : i32, i32
  }
}

</mosaic_0001>

<bundles_post_ra>
// kernel: tpu_custom_call.1
= control target key start
LH: loop header
LB: loop body
LE: loop exit
PB: predicated region body
PF: predicated region fallthrough
CT: control target
= control target key end

     0   :  { %vm32_vm0 = vcmask 261120   ;;  %vm15_vm1 = vcmask 130048   ;;  %v182_v3 = vmov 0.0   ;;  %s270_s1 = inlined_call_operand.vmem [shape: f32[32,16], index: 1, kind: input, shape index: {}]   ;;  %s271_s0 = inlined_call_operand.vmem [shape: f32[32,32], index: 0, kind: input, shape index: {}]   ;;  %s272_s2 = inlined_call_operand.vmem [shape: f32[32,16], index: 2, kind: output, shape index: {}]  }
   0x1   :  { %v28_v0 = vld [vmem:[%s270_s1] sm:$0xff]  ;;  %v29_v1 = vld [vmem:[%s270_s1 + $0x8] sm:$0xff]  ;;  %v30_v2 = vld [vmem:[%s270_s1 + $0x10] sm:$0xff]  ;;  %17 = vst.msk [vmem:[%s272_s2 + $0x8] sm:$0xff] %vm15_vm1, %v182_v3 }
   0x2   :  { %16 = vst.msk [vmem:[%s272_s2] sm:$0xff] %vm15_vm1, %v182_v3  ;;  %18 = vst.msk [vmem:[%s272_s2 + $0x10] sm:$0xff] %vm15_vm1, %v182_v3  ;;  %v169_v4 = vpack.c.bf16 %v29_v1, %v28_v0  ;;  %v31_v5 = vld [vmem:[%s270_s1 + $0x18] sm:$0xff]  ;;  %v24_v6 = vld [vmem:[%s271_s0] sm:$0xff] }
   0x3   :  { %19 = vst.msk [vmem:[%s272_s2 + $0x18] sm:$0xff] %vm15_vm1, %v182_v3  ;;  %v26_v7 = vld [vmem:[%s271_s0 + $0x10] sm:$0xff]  ;;  %v173_v8 = vpack.c.bf16 %v31_v5, %v30_v2  ;;  %163 = vmatprep.mubr.msk.f32.mxu0 %vm32_vm0, %v24_v6  ;;  %v25_v9 = vld [vmem:[%s271_s0 + $0x8] sm:$0xff]  ;;  %v27_v10 = vld [vmem:[%s271_s0 + $0x18] sm:$0xff] }
   0x4   :  { %166 = vmatprep.mubr.msk.f32.mxu1 %vm32_vm0, %v26_v7  ;;  %170 = vmatprep.subr.bf16.mxu0 %v169_v4 }
   0x5   :  { %177 = vmatprep.subr.bf16.mxu1 %v169_v4  ;;  %172 = vmatpush3.bf16.msra.mxu0 %v169_v4 }
   0x6   :  { %179 = vmatpush3.bf16.msra.mxu1 %v169_v4  ;;  %174 = vmatprep.subr.bf16.mxu0 %v173_v8 }
   0x7   :  { %178 = vmatprep.subr.bf16.mxu1 %v173_v8 }
   0x8   :  { %v21_v11 = vld [vmem:[%s272_s2 + $0x8] sm:$0xff] }
   0x9   :  { %176 = vmatpush3.bf16.msra.mxu0 %v173_v8  ;;  %v20_v13 = vld [vmem:[%s272_s2] sm:$0xff]  ;;  %v22_v14 = vld [vmem:[%s272_s2 + $0x10] sm:$0xff] }
   0xa   :  { %180 = vmatpush3.bf16.msra.mxu1 %v173_v8  ;;  %v23_v12 = vld [vmem:[%s272_s2 + $0x18] sm:$0xff] }
   0xc   :  { %164 = vmatmul.mubr.msk.f32.vlgmr.msra.gmra.mrb[0].mxu0 %vm32_vm0, %v25_v9 }
   0xd   :  { %167 = vmatmul.mubr.msk.f32.vlgmr.msra.gmra.mrb[0].mxu1 %vm32_vm0, %v27_v10 }
  0xdf   :  { %v165_v15 = vpop.f32.mrb[0].mxu0 }
  0xe0   :  { %v168_v16 = vpop.f32.mrb[0].mxu1  ;;  %v131_v17 = vadd.f32 %v165_v15, %v21_v11  ;;  %v111_v19 = vpop.f32.mrb[1].mxu0 }
  0xe1   :  { %v133_v18 = vadd.f32 %v168_v16, %v23_v12  ;;  %v121_v20 = vpop.f32.mrb[1].mxu1  ;;  %v130_v21 = vadd.f32 %v111_v19, %v20_v13 }
  0xe2   :  { %v132_v22 = vadd.f32 %v121_v20, %v22_v14  ;;  %136 = vst.msk [vmem:[%s272_s2 + $0x8] sm:$0xff] %vm15_vm1, %v131_v17 }
  0xe3   :  { %138 = vst.msk [vmem:[%s272_s2 + $0x18] sm:$0xff] %vm15_vm1, %v133_v18  ;;  %135 = vst.msk [vmem:[%s272_s2] sm:$0xff] %vm15_vm1, %v130_v21 }
  0xe4   :  { %137 = vst.msk [vmem:[%s272_s2 + $0x10] sm:$0xff] %vm15_vm1, %v132_v22 }

</bundles_post_ra>
